<compile_context>
chip_gen: v7x
topology: tpu7x:2x2x1
jax: 0.10.0
libtpu: 0.0.40
codegen_flags: <defaults>
</compile_context>

<pallas_src>
import jax
import jax.numpy as jnp
from jax.experimental import pallas as pl
from jax.experimental.pallas import tpu as pltpu


# -----------------------------------------------------------------------------
# Fused kernel: iterates over blocks on the grid axis, carrying activations in VMEM.
#   u1, u2 = split(x)
#   v1 = u1 * exp(s2(u2)) + t2(u2)
#   v2 = u2 * exp(s1(v1)) + t1(v1)
# -----------------------------------------------------------------------------
def _fused_network_kernel(
    x_ref,
    w1_st2, b1_st2, w2_s2, b2_s2, w2_t2, b2_t2,
    w1_st1, b1_st1, w2_s1, b2_s1, w2_t1, b2_t1,
    out_ref,
    carry_ref,
):
    dim = x_ref.shape[1] // 2
    hidden = w2_s2.shape[1]          # (1, hidden, dim)
    blk = pl.program_id(0)

    @pl.when(blk == 0)
    def _():
        carry_ref[...] = x_ref[...].astype(jnp.float32)

    u1 = carry_ref[:, :dim]
    u2 = carry_ref[:, dim:]

    # ---- coupling half 1: s2/t2 applied to u2 (fused first layer, N = 2*hidden) ----
    h = jnp.dot(u2, w1_st2[0], preferred_element_type=jnp.float32) + b1_st2[0]
    h = jnp.maximum(h, 0.0)
    s2 = jnp.dot(h[:, :hidden], w2_s2[0], preferred_element_type=jnp.float32) + b2_s2[0]
    t2 = jnp.dot(h[:, hidden:], w2_t2[0], preferred_element_type=jnp.float32) + b2_t2[0]
    v1 = u1 * jnp.exp(s2) + t2

    # ---- coupling half 2: s1/t1 applied to v1 (fused first layer) ----
    h = jnp.dot(v1, w1_st1[0], preferred_element_type=jnp.float32) + b1_st1[0]
    h = jnp.maximum(h, 0.0)
    s1 = jnp.dot(h[:, :hidden], w2_s1[0], preferred_element_type=jnp.float32) + b2_s1[0]
    t1 = jnp.dot(h[:, hidden:], w2_t1[0], preferred_element_type=jnp.float32) + b2_t1[0]
    v2 = u2 * jnp.exp(s1) + t1

    carry_ref[:, :dim] = v1
    carry_ref[:, dim:] = v2

    @pl.when(blk == pl.num_programs(0) - 1)
    def _():
        out_ref[...] = carry_ref[...].astype(out_ref.dtype)


# -----------------------------------------------------------------------------
# Weight packing: stack per-block params along a leading block axis and fuse the
# s/t first-layer weights along the output (N) axis.
# -----------------------------------------------------------------------------
_WEIGHT_ORDER = (
    "w1_st2", "b1_st2", "w2_s2", "b2_s2", "w2_t2", "b2_t2",
    "w1_st1", "b1_st1", "w2_s1", "b2_s1", "w2_t1", "b2_t1",
)


def pack_params(params):
    hidden_sizes = {p["s1"][0].shape[1] for p in params}
    # The single-fused-kernel path streams same-shaped weight tiles per block.
    assert len(hidden_sizes) == 1, "fused kernel requires a uniform hidden size"

    def stack(fn):
        return jnp.stack([fn(p) for p in params], axis=0)

    return {
        "w1_st2": stack(lambda p: jnp.concatenate([p["s2"][0], p["t2"][0]], axis=1)),
        "b1_st2": stack(lambda p: jnp.concatenate([p["s2"][1], p["t2"][1]], axis=1)),
        "w2_s2": stack(lambda p: p["s2"][2]),
        "b2_s2": stack(lambda p: p["s2"][3]),
        "w2_t2": stack(lambda p: p["t2"][2]),
        "b2_t2": stack(lambda p: p["t2"][3]),
        "w1_st1": stack(lambda p: jnp.concatenate([p["s1"][0], p["t1"][0]], axis=1)),
        "b1_st1": stack(lambda p: jnp.concatenate([p["s1"][1], p["t1"][1]], axis=1)),
        "w2_s1": stack(lambda p: p["s1"][2]),
        "b2_s1": stack(lambda p: p["s1"][3]),
        "w2_t1": stack(lambda p: p["t1"][2]),
        "b2_t1": stack(lambda p: p["t1"][3]),
    }


def invertible_network_forward(x, params):
    """Full InvertibleNetwork.forward in one pallas_call. x: (B, D), D even."""
    B, D = x.shape
    dim = D // 2
    num_blocks = len(params)

    packed = pack_params(params)
    weight_args = [packed[k] for k in _WEIGHT_ORDER]
    hidden = packed["w2_s2"].shape[1]

    def weight_spec(arr):
        # Stream one block's slice per grid step (double-buffered by the pipeline).
        return pl.BlockSpec((1,) + arr.shape[1:], lambda b: (b, 0, 0))

    # Batch fits a single tile here; for larger B add a leading 'parallel' batch
    # grid axis with TILE_B a multiple of 8 (fp32) and a carry per batch tile.
    in_specs = [pl.BlockSpec((B, D), lambda b: (0, 0))] + [weight_spec(a) for a in weight_args]
    out_spec = pl.BlockSpec((B, D), lambda b: (0, 0))

    weight_bytes = sum(int(a.size) * a.dtype.itemsize for a in weight_args)
    cost = pl.CostEstimate(
        flops=int(16 * num_blocks * B * dim * hidden),
        transcendentals=int(2 * num_blocks * B * dim),
        bytes_accessed=int(weight_bytes + 2 * x.size * x.dtype.itemsize),
    )

    return pl.pallas_call(
        _fused_network_kernel,
        out_shape=jax.ShapeDtypeStruct((B, D), x.dtype),
        grid_spec=pltpu.PrefetchScalarGridSpec(
            num_scalar_prefetch=0,
            grid=(num_blocks,),
            in_specs=in_specs,
            out_specs=out_spec,
            scratch_shapes=[pltpu.VMEM((B, D), jnp.float32)],  # activation carry
        ),
        compiler_params=pltpu.CompilerParams(
            dimension_semantics=("arbitrary",),      # sequential block chain
            vmem_limit_bytes=32 * 1024 * 1024,        # sized against v7x's 64 MiB VMEM
        ),
        input_output_aliases={0: 0},                  # alias x -> out (same shape/dtype)
        cost_estimate=cost,
    )(x, *weight_args)


# -----------------------------------------------------------------------------
# Deterministic parameter initialization (shapes implied by the torch module).
# -----------------------------------------------------------------------------
def init_feedforward(key, input_size, hidden_size, output_size, scale=0.05):
    k1, k2, k3, k4 = jax.random.split(key, 4)
    w1 = scale * jax.random.normal(k1, (input_size, hidden_size), jnp.float32)
    b1 = scale * jax.random.normal(k2, (1, hidden_size), jnp.float32)
    w2 = scale * jax.random.normal(k3, (hidden_size, output_size), jnp.float32)
    b2 = scale * jax.random.normal(k4, (1, output_size), jnp.float32)
    return (w1, b1, w2, b2)


def init_network(key, input_output_size, hidden_sizes):
    assert input_output_size % 2 == 0
    dim = input_output_size // 2
    params = []
    for hidden_size in hidden_sizes:
        key, ks1, ks2, kt1, kt2 = jax.random.split(key, 5)
        params.append({
            "s1": init_feedforward(ks1, dim, hidden_size, dim),
            "s2": init_feedforward(ks2, dim, hidden_size, dim),
            "t1": init_feedforward(kt1, dim, hidden_size, dim),
            "t2": init_feedforward(kt2, dim, hidden_size, dim),
        })
    return params


# -----------------------------------------------------------------------------
# Plain-JAX reference (mirrors the PyTorch forward) for a correctness check.
# -----------------------------------------------------------------------------
def _ff_ref(x, p):
    w1, b1, w2, b2 = p
    return jnp.maximum(x @ w1 + b1, 0.0) @ w2 + b2


def reference_forward(x, params):
    out = x
    for bp in params:
        dim = out.shape[1] // 2
        u1, u2 = out[:, :dim], out[:, dim:]
        v1 = u1 * jnp.exp(_ff_ref(u2, bp["s2"])) + _ff_ref(u2, bp["t2"])
        v2 = u2 * jnp.exp(_ff_ref(v1, bp["s1"])) + _ff_ref(v1, bp["t1"])
        out = jnp.concatenate([v1, v2], axis=1)
    return out


# NOTE: only the forward pass is implemented; InvertibleBlock.backward and the
# (unused-in-forward) z_dist sampling are out of scope for this kernel.

if __name__ == "__main__":
    # Small shapes consistent with the module: batch=8, input_output_size=256,
    # two blocks with hidden_size=128 each (TPU-friendly: multiples of (8, 128)).
    B = 8
    INPUT_OUTPUT_SIZE = 256
    HIDDEN_SIZES = (128, 128)

    key = jax.random.PRNGKey(0)
    kx, kp = jax.random.split(key)
    x = jax.random.normal(kx, (B, INPUT_OUTPUT_SIZE), jnp.float32)
    params = init_network(kp, INPUT_OUTPUT_SIZE, HIDDEN_SIZES)

    ref = reference_forward(x, params)

    forward = jax.jit(invertible_network_forward)
    out = forward(x, params)
    out = jax.block_until_ready(out)

    assert out.shape == (B, INPUT_OUTPUT_SIZE)
    assert jnp.allclose(out, ref, atol=1e-4, rtol=1e-4), "mismatch vs reference"

    print("KERNEL_OK")
</pallas_src>

<mosaic_0001>
module attributes {stable_mosaic.version = 11 : i64} {
  func.func @_fused_network_kernel(%arg0: i32, %arg1: memref<8x256xf32, #tpu.memory_space<vmem>>, %arg2: memref<1x128x256xf32, #tpu.memory_space<vmem>>, %arg3: memref<1x1x256xf32, #tpu.memory_space<vmem>>, %arg4: memref<1x128x128xf32, #tpu.memory_space<vmem>>, %arg5: memref<1x1x128xf32, #tpu.memory_space<vmem>>, %arg6: memref<1x128x128xf32, #tpu.memory_space<vmem>>, %arg7: memref<1x1x128xf32, #tpu.memory_space<vmem>>, %arg8: memref<1x128x256xf32, #tpu.memory_space<vmem>>, %arg9: memref<1x1x256xf32, #tpu.memory_space<vmem>>, %arg10: memref<1x128x128xf32, #tpu.memory_space<vmem>>, %arg11: memref<1x1x128xf32, #tpu.memory_space<vmem>>, %arg12: memref<1x128x128xf32, #tpu.memory_space<vmem>>, %arg13: memref<1x1x128xf32, #tpu.memory_space<vmem>>, %arg14: memref<8x256xf32, #tpu.memory_space<vmem>>, %arg15: memref<8x256xf32, #tpu.memory_space<vmem>>) attributes {dimension_semantics = [#tpu.dimension_semantics<arbitrary>], iteration_bounds = array<i64: 2>, scalar_prefetch = 0 : i64, scratch_operands = 1 : i64, tpu.core_type = #tpu.core_type<tc>, window_params = [{pipeline_mode = #tpu.pipeline_mode<synchronous>, transform_indices = @transform_0, window_bounds = array<i64: 8, 256>}, {transform_indices = @transform_1, window_bounds = array<i64: 1, 128, 256>}, {transform_indices = @transform_2, window_bounds = array<i64: 1, 1, 256>}, {transform_indices = @transform_3, window_bounds = array<i64: 1, 128, 128>}, {transform_indices = @transform_4, window_bounds = array<i64: 1, 1, 128>}, {transform_indices = @transform_5, window_bounds = array<i64: 1, 128, 128>}, {transform_indices = @transform_6, window_bounds = array<i64: 1, 1, 128>}, {transform_indices = @transform_7, window_bounds = array<i64: 1, 128, 256>}, {transform_indices = @transform_8, window_bounds = array<i64: 1, 1, 256>}, {transform_indices = @transform_9, window_bounds = array<i64: 1, 128, 128>}, {transform_indices = @transform_10, window_bounds = array<i64: 1, 1, 128>}, {transform_indices = @transform_11, window_bounds = array<i64: 1, 128, 128>}, {transform_indices = @transform_12, window_bounds = array<i64: 1, 1, 128>}, {pipeline_mode = #tpu.pipeline_mode<synchronous>, transform_indices = @transform_13, window_bounds = array<i64: 8, 256>}]} {
    %c0_i32 = arith.constant 0 : i32
    %0 = arith.cmpi eq, %arg0, %c0_i32 : i32
    %1 = arith.extui %0 : i1 to i32
    %c0_i32_0 = arith.constant 0 : i32
    %2 = arith.cmpi ne, %1, %c0_i32_0 : i32
    scf.if %2 {
      %c0_51 = arith.constant 0 : index
      %c0_52 = arith.constant 0 : index
      %66 = vector.load %arg1[%c0_51, %c0_52] : memref<8x256xf32, #tpu.memory_space<vmem>>, vector<8x256xf32>
      %c0_53 = arith.constant 0 : index
      %c0_54 = arith.constant 0 : index
      %67 = vector.load %arg15[%c0_53, %c0_54] : memref<8x256xf32, #tpu.memory_space<vmem>>, vector<8x256xf32>
      tpu.vector_store %arg15[%c0_53, %c0_54], %66 {strides = array<i32>} : memref<8x256xf32, #tpu.memory_space<vmem>>, vector<8x256xf32>,
    } else {
    }
    %c0 = arith.constant 0 : index
    %c0_1 = arith.constant 0 : index
    %3 = vector.load %arg15[%c0, %c0_1] : memref<8x256xf32, #tpu.memory_space<vmem>>, vector<8x128xf32>
    %c0_2 = arith.constant 0 : index
    %c128 = arith.constant 128 : index
    %4 = vector.load %arg15[%c0_2, %c128] : memref<8x256xf32, #tpu.memory_space<vmem>>, vector<8x128xf32>
    %c0_3 = arith.constant 0 : index
    %c0_4 = arith.constant 0 : index
    %c0_5 = arith.constant 0 : index
    %5 = vector.load %arg2[%c0_3, %c0_4, %c0_5] : memref<1x128x256xf32, #tpu.memory_space<vmem>>, vector<1x128x256xf32>
    %6 = vector.shape_cast %5 : vector<1x128x256xf32> to vector<128x256xf32>
    %cst = arith.constant dense<0.000000e+00> : vector<8x256xf32>
    %7 = tpu.matmul %4, %6, %cst {dimension_numbers = #tpu.dot_dimension_numbers<[1], [0], [0], [1], [0, 0, 1, 1], [], []>} : vector<8x128xf32>, vector<128x256xf32>, vector<8x256xf32> -> vector<8x256xf32>
    %c0_6 = arith.constant 0 : index
    %c0_7 = arith.constant 0 : index
    %c0_8 = arith.constant 0 : index
    %8 = vector.load %arg3[%c0_6, %c0_7, %c0_8] : memref<1x1x256xf32, #tpu.memory_space<vmem>>, vector<1x1x256xf32>
    %9 = vector.shape_cast %8 : vector<1x1x256xf32> to vector<1x256xf32>
    %10 = vector.broadcast %9 : vector<1x256xf32> to vector<8x256xf32>
    %11 = arith.addf %7, %10 : vector<8x256xf32>
    %cst_9 = arith.constant 0.000000e+00 : f32
    %12 = vector.broadcast %cst_9 : f32 to vector<8x256xf32>
    %13 = arith.maximumf %11, %12 : vector<8x256xf32>
    %14 = vector.extract_strided_slice %13 {offsets = [0, 0], sizes = [8, 128], strides = [1, 1]} : vector<8x256xf32> to vector<8x128xf32>
    %c0_10 = arith.constant 0 : index
    %c0_11 = arith.constant 0 : index
    %c0_12 = arith.constant 0 : index
    %15 = vector.load %arg4[%c0_10, %c0_11, %c0_12] : memref<1x128x128xf32, #tpu.memory_space<vmem>>, vector<1x128x128xf32>
    %16 = vector.shape_cast %15 : vector<1x128x128xf32> to vector<128x128xf32>
    %cst_13 = arith.constant dense<0.000000e+00> : vector<8x128xf32>
    %17 = tpu.matmul %14, %16, %cst_13 {dimension_numbers = #tpu.dot_dimension_numbers<[1], [0], [0], [1], [0, 0, 1, 1], [], []>} : vector<8x128xf32>, vector<128x128xf32>, vector<8x128xf32> -> vector<8x128xf32>
    %c0_14 = arith.constant 0 : index
    %c0_15 = arith.constant 0 : index
    %c0_16 = arith.constant 0 : index
    %18 = vector.load %arg5[%c0_14, %c0_15, %c0_16] : memref<1x1x128xf32, #tpu.memory_space<vmem>>, vector<1x1x128xf32>
    %19 = vector.shape_cast %18 : vector<1x1x128xf32> to vector<1x128xf32>
    %20 = vector.broadcast %19 : vector<1x128xf32> to vector<8x128xf32>
    %21 = arith.addf %17, %20 : vector<8x128xf32>
    %22 = vector.extract_strided_slice %13 {offsets = [0, 128], sizes = [8, 128], strides = [1, 1]} : vector<8x256xf32> to vector<8x128xf32>
    %c0_17 = arith.constant 0 : index
    %c0_18 = arith.constant 0 : index
    %c0_19 = arith.constant 0 : index
    %23 = vector.load %arg6[%c0_17, %c0_18, %c0_19] : memref<1x128x128xf32, #tpu.memory_space<vmem>>, vector<1x128x128xf32>
    %24 = vector.shape_cast %23 : vector<1x128x128xf32> to vector<128x128xf32>
    %cst_20 = arith.constant dense<0.000000e+00> : vector<8x128xf32>
    %25 = tpu.matmul %22, %24, %cst_20 {dimension_numbers = #tpu.dot_dimension_numbers<[1], [0], [0], [1], [0, 0, 1, 1], [], []>} : vector<8x128xf32>, vector<128x128xf32>, vector<8x128xf32> -> vector<8x128xf32>
    %c0_21 = arith.constant 0 : index
    %c0_22 = arith.constant 0 : index
    %c0_23 = arith.constant 0 : index
    %26 = vector.load %arg7[%c0_21, %c0_22, %c0_23] : memref<1x1x128xf32, #tpu.memory_space<vmem>>, vector<1x1x128xf32>
    %27 = vector.shape_cast %26 : vector<1x1x128xf32> to vector<1x128xf32>
    %28 = vector.broadcast %27 : vector<1x128xf32> to vector<8x128xf32>
    %29 = arith.addf %25, %28 : vector<8x128xf32>
    %30 = math.exp %21 : vector<8x128xf32>
    %31 = arith.mulf %3, %30 : vector<8x128xf32>
    %32 = arith.addf %31, %29 : vector<8x128xf32>
    %c0_24 = arith.constant 0 : index
    %c0_25 = arith.constant 0 : index
    %c0_26 = arith.constant 0 : index
    %33 = vector.load %arg8[%c0_24, %c0_25, %c0_26] : memref<1x128x256xf32, #tpu.memory_space<vmem>>, vector<1x128x256xf32>
    %34 = vector.shape_cast %33 : vector<1x128x256xf32> to vector<128x256xf32>
    %cst_27 = arith.constant dense<0.000000e+00> : vector<8x256xf32>
    %35 = tpu.matmul %32, %34, %cst_27 {dimension_numbers = #tpu.dot_dimension_numbers<[1], [0], [0], [1], [0, 0, 1, 1], [], []>} : vector<8x128xf32>, vector<128x256xf32>, vector<8x256xf32> -> vector<8x256xf32>
    %c0_28 = arith.constant 0 : index
    %c0_29 = arith.constant 0 : index
    %c0_30 = arith.constant 0 : index
    %36 = vector.load %arg9[%c0_28, %c0_29, %c0_30] : memref<1x1x256xf32, #tpu.memory_space<vmem>>, vector<1x1x256xf32>
    %37 = vector.shape_cast %36 : vector<1x1x256xf32> to vector<1x256xf32>
    %38 = vector.broadcast %37 : vector<1x256xf32> to vector<8x256xf32>
    %39 = arith.addf %35, %38 : vector<8x256xf32>
    %cst_31 = arith.constant 0.000000e+00 : f32
    %40 = vector.broadcast %cst_31 : f32 to vector<8x256xf32>
    %41 = arith.maximumf %39, %40 : vector<8x256xf32>
    %42 = vector.extract_strided_slice %41 {offsets = [0, 0], sizes = [8, 128], strides = [1, 1]} : vector<8x256xf32> to vector<8x128xf32>
    %c0_32 = arith.constant 0 : index
    %c0_33 = arith.constant 0 : index
    %c0_34 = arith.constant 0 : index
    %43 = vector.load %arg10[%c0_32, %c0_33, %c0_34] : memref<1x128x128xf32, #tpu.memory_space<vmem>>, vector<1x128x128xf32>
    %44 = vector.shape_cast %43 : vector<1x128x128xf32> to vector<128x128xf32>
    %cst_35 = arith.constant dense<0.000000e+00> : vector<8x128xf32>
    %45 = tpu.matmul %42, %44, %cst_35 {dimension_numbers = #tpu.dot_dimension_numbers<[1], [0], [0], [1], [0, 0, 1, 1], [], []>} : vector<8x128xf32>, vector<128x128xf32>, vector<8x128xf32> -> vector<8x128xf32>
    %c0_36 = arith.constant 0 : index
    %c0_37 = arith.constant 0 : index
    %c0_38 = arith.constant 0 : index
    %46 = vector.load %arg11[%c0_36, %c0_37, %c0_38] : memref<1x1x128xf32, #tpu.memory_space<vmem>>, vector<1x1x128xf32>
    %47 = vector.shape_cast %46 : vector<1x1x128xf32> to vector<1x128xf32>
    %48 = vector.broadcast %47 : vector<1x128xf32> to vector<8x128xf32>
    %49 = arith.addf %45, %48 : vector<8x128xf32>
    %50 = vector.extract_strided_slice %41 {offsets = [0, 128], sizes = [8, 128], strides = [1, 1]} : vector<8x256xf32> to vector<8x128xf32>
    %c0_39 = arith.constant 0 : index
    %c0_40 = arith.constant 0 : index
    %c0_41 = arith.constant 0 : index
    %51 = vector.load %arg12[%c0_39, %c0_40, %c0_41] : memref<1x128x128xf32, #tpu.memory_space<vmem>>, vector<1x128x128xf32>
    %52 = vector.shape_cast %51 : vector<1x128x128xf32> to vector<128x128xf32>
    %cst_42 = arith.constant dense<0.000000e+00> : vector<8x128xf32>
    %53 = tpu.matmul %50, %52, %cst_42 {dimension_numbers = #tpu.dot_dimension_numbers<[1], [0], [0], [1], [0, 0, 1, 1], [], []>} : vector<8x128xf32>, vector<128x128xf32>, vector<8x128xf32> -> vector<8x128xf32>
    %c0_43 = arith.constant 0 : index
    %c0_44 = arith.constant 0 : index
    %c0_45 = arith.constant 0 : index
    %54 = vector.load %arg13[%c0_43, %c0_44, %c0_45] : memref<1x1x128xf32, #tpu.memory_space<vmem>>, vector<1x1x128xf32>
    %55 = vector.shape_cast %54 : vector<1x1x128xf32> to vector<1x128xf32>
    %56 = vector.broadcast %55 : vector<1x128xf32> to vector<8x128xf32>
    %57 = arith.addf %53, %56 : vector<8x128xf32>
    %58 = math.exp %49 : vector<8x128xf32>
    %59 = arith.mulf %4, %58 : vector<8x128xf32>
    %60 = arith.addf %59, %57 : vector<8x128xf32>
    %c0_46 = arith.constant 0 : index
    %c0_47 = arith.constant 0 : index
    %61 = vector.load %arg15[%c0_46, %c0_47] : memref<8x256xf32, #tpu.memory_space<vmem>>, vector<8x128xf32>
    tpu.vector_store %arg15[%c0_46, %c0_47], %32 {strides = array<i32>} : memref<8x256xf32, #tpu.memory_space<vmem>>, vector<8x128xf32>,
    %c0_48 = arith.constant 0 : index
    %c128_49 = arith.constant 128 : index
    %62 = vector.load %arg15[%c0_48, %c128_49] : memref<8x256xf32, #tpu.memory_space<vmem>>, vector<8x128xf32>
    tpu.vector_store %arg15[%c0_48, %c128_49], %60 {strides = array<i32>} : memref<8x256xf32, #tpu.memory_space<vmem>>, vector<8x128xf32>,
    %c1_i32 = arith.constant 1 : i32
    %63 = arith.cmpi eq, %arg0, %c1_i32 : i32
    %64 = arith.extui %63 : i1 to i32
    %c0_i32_50 = arith.constant 0 : i32
    %65 = arith.cmpi ne, %64, %c0_i32_50 : i32
    scf.if %65 {
      %c0_51 = arith.constant 0 : index
      %c0_52 = arith.constant 0 : index
      %66 = vector.load %arg15[%c0_51, %c0_52] : memref<8x256xf32, #tpu.memory_space<vmem>>, vector<8x256xf32>
      %c0_53 = arith.constant 0 : index
      %c0_54 = arith.constant 0 : index
      %67 = vector.load %arg14[%c0_53, %c0_54] : memref<8x256xf32, #tpu.memory_space<vmem>>, vector<8x256xf32>
      tpu.vector_store %arg14[%c0_53, %c0_54], %66 {strides = array<i32>} : memref<8x256xf32, #tpu.memory_space<vmem>>, vector<8x256xf32>,
    } else {
    }
    return
  }
  func.func @transform_0(%arg0: i32) -> (i32, i32) {
    %c0_i32 = arith.constant 0 : i32
    %c0_i32_0 = arith.constant 0 : i32
    %c0_i32_1 = arith.constant 0 : i32
    return %c0_i32, %c0_i32_0 : i32, i32
  }
  func.func @transform_1(%arg0: i32) -> (i32, i32, i32) {
    %c0_i32 = arith.constant 0 : i32
    %c0_i32_0 = arith.constant 0 : i32
    %c0_i32_1 = arith.constant 0 : i32
    return %arg0, %c0_i32, %c0_i32_0 : i32, i32, i32
  }
  func.func @transform_2(%arg0: i32) -> (i32, i32, i32) {
    %c0_i32 = arith.constant 0 : i32
    %c0_i32_0 = arith.constant 0 : i32
    %c0_i32_1 = arith.constant 0 : i32
    return %arg0, %c0_i32, %c0_i32_0 : i32, i32, i32
  }
  func.func @transform_3(%arg0: i32) -> (i32, i32, i32) {
    %c0_i32 = arith.constant 0 : i32
    %c0_i32_0 = arith.constant 0 : i32
    %c0_i32_1 = arith.constant 0 : i32
    return %arg0, %c0_i32, %c0_i32_0 : i32, i32, i32
  }
  func.func @transform_4(%arg0: i32) -> (i32, i32, i32) {
    %c0_i32 = arith.constant 0 : i32
    %c0_i32_0 = arith.constant 0 : i32
    %c0_i32_1 = arith.constant 0 : i32
    return %arg0, %c0_i32, %c0_i32_0 : i32, i32, i32
  }
  func.func @transform_5(%arg0: i32) -> (i32, i32, i32) {
    %c0_i32 = arith.constant 0 : i32
    %c0_i32_0 = arith.constant 0 : i32
    %c0_i32_1 = arith.constant 0 : i32
    return %arg0, %c0_i32, %c0_i32_0 : i32, i32, i32
  }
  func.func @transform_6(%arg0: i32) -> (i32, i32, i32) {
    %c0_i32 = arith.constant 0 : i32
    %c0_i32_0 = arith.constant 0 : i32
    %c0_i32_1 = arith.constant 0 : i32
    return %arg0, %c0_i32, %c0_i32_0 : i32, i32, i32
  }
  func.func @transform_7(%arg0: i32) -> (i32, i32, i32) {
    %c0_i32 = arith.constant 0 : i32
    %c0_i32_0 = arith.constant 0 : i32
    %c0_i32_1 = arith.constant 0 : i32
    return %arg0, %c0_i32, %c0_i32_0 : i32, i32, i32
  }
  func.func @transform_8(%arg0: i32) -> (i32, i32, i32) {
    %c0_i32 = arith.constant 0 : i32
    %c0_i32_0 = arith.constant 0 : i32
    %c0_i32_1 = arith.constant 0 : i32
    return %arg0, %c0_i32, %c0_i32_0 : i32, i32, i32
  }
  func.func @transform_9(%arg0: i32) -> (i32, i32, i32) {
    %c0_i32 = arith.constant 0 : i32
    %c0_i32_0 = arith.constant 0 : i32
    %c0_i32_1 = arith.constant 0 : i32
    return %arg0, %c0_i32, %c0_i32_0 : i32, i32, i32
  }
  func.func @transform_10(%arg0: i32) -> (i32, i32, i32) {
    %c0_i32 = arith.constant 0 : i32
    %c0_i32_0 = arith.constant 0 : i32
    %c0_i32_1 = arith.constant 0 : i32
    return %arg0, %c0_i32, %c0_i32_0 : i32, i32, i32
  }
  func.func @transform_11(%arg0: i32) -> (i32, i32, i32) {
    %c0_i32 = arith.constant 0 : i32
    %c0_i32_0 = arith.constant 0 : i32
    %c0_i32_1 = arith.constant 0 : i32
    return %arg0, %c0_i32, %c0_i32_0 : i32, i32, i32
  }
  func.func @transform_12(%arg0: i32) -> (i32, i32, i32) {
    %c0_i32 = arith.constant 0 : i32
    %c0_i32_0 = arith.constant 0 : i32
    %c0_i32_1 = arith.constant 0 : i32
    return %arg0, %c0_i32, %c0_i32_0 : i32, i32, i32
  }
  func.func @transform_13(%arg0: i32) -> (i32, i32) {
    %c0_i32 = arith.constant 0 : i32
    %c0_i32_0 = arith.constant 0 : i32
    %c0_i32_1 = arith.constant 0 : i32
    return %c0_i32, %c0_i32_0 : i32, i32
  }
}

</mosaic_0001>

<bundles_post_ra>
// kernel: invertible_network_forward.1
= control target key start
LH: loop header
LB: loop body
LE: loop exit
PB: predicated region body
PF: predicated region fallthrough
CT: control target
= control target key end

     0   :  { %s2370_s0 = inlined_call_operand.hbm [shape: f32[8,256], index: 0, kind: input, shape index: {}, may-alias: {0,13}]   ;;  %s2371_s1 = inlined_call_operand.vmem [shape: f32[2,128,256], index: 1, kind: input, shape index: {}]   ;;  %s2372_s2 = inlined_call_operand.vmem [shape: f32[2,1,256], index: 2, kind: input, shape index: {}]   ;;  %s2373_s3 = inlined_call_operand.vmem [shape: f32[2,128,128], index: 3, kind: input, shape index: {}]   ;;  %s2374_s4 = inlined_call_operand.vmem [shape: f32[2,1,128], index: 4, kind: input, shape index: {}]   ;;  %s2375_s5 = inlined_call_operand.vmem [shape: f32[2,128,128], index: 5, kind: input, shape index: {}]   ;;  %s2376_s6 = inlined_call_operand.vmem [shape: f32[2,1,128], index: 6, kind: input, shape index: {}]   ;;  %s2377_s7 = inlined_call_operand.vmem [shape: f32[2,128,256], index: 7, kind: input, shape index: {}]   ;;  %s2378_s8 = inlined_call_operand.vmem [shape: f32[2,1,256], index: 8, kind: input, shape index: {}]   ;;  %s2379_s9 = inlined_call_operand.vmem [shape: f32[2,128,128], index: 9, kind: input, shape index: {}]   ;;  %s2380_s10 = inlined_call_operand.vmem [shape: f32[2,1,128], index: 10, kind: input, shape index: {}]   ;;  %s2381_s11 = inlined_call_operand.vmem [shape: f32[2,128,128], index: 11, kind: input, shape index: {}]   ;;  %s2382_s12 = inlined_call_operand.vmem [shape: f32[2,1,128], index: 12, kind: input, shape index: {}]   ;;  %s2383_s13 = inlined_call_operand.hbm [shape: f32[8,256], index: 13, kind: output, shape index: {}, may-alias: {0,13}]  }
   0x1   :  { %2388 = sst [smem:[#allocation11_spill]] %s2370_s0 }
   0x2   :  { %2389 = sst [smem:[#allocation12_spill]] %s2371_s1 }
   0x3   :  { %2390 = sst [smem:[#allocation13_spill]] %s2372_s2 }
   0x4   :  { %2391 = sst [smem:[#allocation14_spill]] %s2373_s3 }
   0x5   :  { %2392 = sst [smem:[#allocation15_spill]] %s2383_s13 }
   0x6   :  { %18 = vsyncpa [#allocation4], 0 }
   0x7   :  { %19 = vsyncpa [#allocation5], 0  ;;  %s2024_s25 = smov 0  }
   0x8 LB: > { %2393 = sst [smem:[#allocation9_spill]] %s1947_s25  ;;  %s2030_s26 = sadd.s32 4294967295, %s1947_s25   ;;  %s1947_s25 = sphi %s2024_s25, %s25_s25  }
   0x9   : > { %p1443_p0 = scmp.ge.s32.totalorder %s1947_s25, 1  ;;  %p384_p1 = scmp.lt.s32.totalorder %s1947_s25, 3 }
   0xa   : > { %p2384_p4 = scmp.eq.s32.totalorder %s2030_s26, 0  ;;  %s1949_s28 = smov [#allocation3]  }
   0xb   : > { %p2035_p3 = pnand %p1443_p0, %p384_p1  ;;  %s397_s29 = sshll.u32 %s1949_s28, 4  ;;  %s398_s29 = int_to_ptr.vmem [resolvable:$true] %s397_s29 }
   0xc   : > { %s2396_s0 = sld [smem:[#allocation11_spill]] }
   0xd   : > { %s2394_s27 = scalar_select %p2035_p3, 1, 0 }
   0xe   : > { %p1854_p5 = pneg %p2035_p3 }
  0x10   : > { %p2044_p6 = pnand %p2384_p4, %p1854_p5 }
  0x12   : > { %s1879_s16 = scalar_lea.hbm %s2396_s0, 256  ;;  %p1881_p8 = pneg %p2044_p6 }
  0x13   : > { %p1880_p7 = scmp.ne.s32.totalorder %s2396_s0, %s1879_s16  ;;  %p1886_p11 = scmp.lt.u32.totalorder %s1879_s16, %s2396_s0 }
  0x15   : > { %p1882_p9 = pnand %p1881_p8, %p1880_p7 }
  0x17   : > { %p1883_p10 = pneg %p1882_p9 }
  0x19   : > { %p1888_p12 = pnand %p1886_p11, %p1883_p10 }
  0x1b   : > { %1891 = shalt.err (!%p1888_p12)
}
  0x1c   : > { %s1892_s21 = scalar_lea.vmem %s398_s29, 256  ;;  %p1900_p5 = scmp.lt.s32.totalorder %s398_s29, %s398_s29 }
  0x1d   : > { %p1893_p13 = scmp.ne.s32.totalorder %s398_s29, %s1892_s21  ;;  %p1901_p2 = scmp.lt.s32.totalorder %s1892_s21, %s1892_s21 }
  0x1f   : > { %p1895_p0 = pnand %p1893_p13, %p1881_p8  ;;  %p1902_p4 = por %p1901_p2, %p1900_p5 }
  0x21   : > { %p1896_p1 = pneg %p1895_p0 }
  0x23   : > { %p1903_p3 = pnand %p1902_p4, %p1896_p1 }
  0x25   : > { %1906 = shalt.err (!%p1903_p3)
}
  0x26   : > { %1857 = dma.hbm_to_vmem [thread:$0]  (!%p2044_p6), %s2396_s0, 256, %s398_s29, [#allocation4]  }
  0x27   : > { %p2397_p7 = scmp.ne.s32.totalorder %s2394_s27, 0 }
  0x29   : > { %496 = sbr.rel (%p2397_p7) target bundleno = 1038 (0x40e), region = 72 }
  0x30   : > { %p2398_p9 = scmp.eq.s32.totalorder %s2030_s26, 0 }
  0x32   : > { %1938 = dma.done.wait (%p2398_p9), [#allocation4], 256   ;;  %p2399_p8 = pmov %p2398_p9 }
  0x33   : > { %p580_p2 = scmp.lt.s32.totalorder %s2030_s26, 1  ;;  %s2400_s1 = sld [smem:[#allocation12_spill]] }
  0x34   : > { %1940 = vsyncadd (%p2399_p8), [#allocation4], 4294967040  ;;  %s2401_s2 = sld [smem:[#allocation13_spill]]  ;;  %s2403_s3 = sld [smem:[#allocation14_spill]] }
  0x35   : > { %s2072_s24 = scalar_select %p580_p2, %s2030_s26, 1 }
  0x36   : > { %p2404_p3 = scmp.ne.s32.totalorder %s2030_s26, 0 }
  0x37   : > { %s1472_s27 = sshll.u32 %s2072_s24, 8  ;;  %s1450_s28 = sshll.u32 %s2072_s24, 1  ;;  %v634_v0 = vld [vmem:[#allocation3] sm:$0xff] (!%p2404_p3)  ;;  %v635_v1 = vld [vmem:[#allocation3 + $0x8] sm:$0xff] (!%p2404_p3) }
  0x38   : > { %s1473_s18 = sshll.u32 %s2072_s24, 7  ;;  %s2113_s22 = scalar_lea.vmem %s2378_s8, %s1450_s28  ;;  %636 = vst [vmem:[#allocation2] sm:$0xff] (!%p2404_p3), %v634_v0  ;;  %637 = vst [vmem:[#allocation2 + $0x8] sm:$0xff] (!%p2404_p3), %v635_v1 }
  0x39   : > { %s2079_s14 = scalar_lea.vmem %s2400_s1, %s1472_s27  ;;  %s2099_s29 = scalar_lea.vmem %s2375_s5, %s1473_s18 }
  0x3a   : > { %s2084_s17 = scalar_lea.vmem %s2401_s2, %s1450_s28  ;;  %s2094_s0 = scalar_lea.vmem %s2403_s3, %s1473_s18 }
  0x3b   : > { %2402 = sst [smem:[#allocation10_spill]] %s2084_s17  ;;  %s2108_s17 = scalar_lea.vmem %s2377_s7, %s1472_s27 }
  0x3c   : > { %s2118_s13 = scalar_lea.vmem %s2379_s9, %s1473_s18  ;;  %s621_s1 = scalar_lea.vmem %s2380_s10, %s2072_s24 }
  0x3d   : > { %s2127_s2 = scalar_lea.vmem %s2381_s11, %s1473_s18  ;;  %s629_s19 = scalar_lea.vmem %s2382_s12, %s2072_s24 }
  0x3e   : > { %633 = sbr.rel (%p2404_p3) target bundleno = 69 (0x45), region = 80 }
  0x45 PF: > { %v641_v2 = vld [vmem:[%s2079_s14 + $0x8] sm:$0xff]  ;;  %v643_v3 = vld [vmem:[%s2079_s14 + $0x18] sm:$0xff]  ;;  %v640_v4 = vld [vmem:[%s2079_s14] sm:$0xff]  ;;  %v1950_v9 = vmov 0.0   ;;  %v1951_v10 = vmov 0.0|0.0   ;;  %s2405_s3 = sld [smem:[#allocation10_spill]]  ;;  %s2407_s21 = scalar_lea.vmem %s2376_s6, %s2072_s24 }
  0x46   : > { %v1686_v5 = vpack.c.bf16 %v643_v3, %v641_v2  ;;  %v642_v6 = vld [vmem:[%s2079_s14 + $0x10] sm:$0xff]  ;;  %v645_v7 = vld [vmem:[%s2079_s14 + $0x28] sm:$0xff]  ;;  %v647_v8 = vld [vmem:[%s2079_s14 + $0x38] sm:$0xff]  ;;  %748 = vmatprep.mubr.f32.mxu0 %v1950_v9  ;;  %1718 = vmatprep.subr.bf16.mxu1 %v1951_v10  ;;  %vm1952_vm0 = vmmov 0   ;;  %p1467_p4 = scmp.ne.s32.totalorder %s2030_s26, 1 }
  0x47   : > { %v1688_v11 = vpack.c.bf16 %v642_v6, %v640_v4  ;;  %v1690_v12 = vpack.c.bf16 %v647_v8, %v645_v7  ;;  %v644_v13 = vld [vmem:[%s2079_s14 + $0x20] sm:$0xff]  ;;  %v646_v14 = vld [vmem:[%s2079_s14 + $0x30] sm:$0xff]  ;;  %v649_v15 = vld [vmem:[%s2079_s14 + $0x48] sm:$0xff]  ;;  %1578 = vmatprep.mubr.msk.f32.mxu1 %vm1952_vm0, %v1950_v9 }
  0x48   : > { %1687 = vmatprep.subr.bf16.mxu0 %v1686_v5  ;;  %v651_v16 = vld [vmem:[%s2079_s14 + $0x58] sm:$0xff]  ;;  %v1692_v17 = vpack.c.bf16 %v646_v14, %v644_v13  ;;  %v648_v19 = vld [vmem:[%s2079_s14 + $0x40] sm:$0xff]  ;;  %v650_v20 = vld [vmem:[%s2079_s14 + $0x50] sm:$0xff] }
  0x49   : > { %1689 = vmatpush1.bf16.msra.mxu0 %v1688_v11  ;;  %v1694_v18 = vpack.c.bf16 %v651_v16, %v649_v15  ;;  %v653_v21 = vld [vmem:[%s2079_s14 + $0x68] sm:$0xff]  ;;  %v655_v22 = vld [vmem:[%s2079_s14 + $0x78] sm:$0xff]  ;;  %v1696_v23 = vpack.c.bf16 %v650_v20, %v648_v19  ;;  %v652_v25 = vld [vmem:[%s2079_s14 + $0x60] sm:$0xff] }
  0x4a   : > { %1691 = vmatprep.subr.bf16.mxu0 %v1690_v12  ;;  %v1698_v24 = vpack.c.bf16 %v655_v22, %v653_v21  ;;  %v654_v26 = vld [vmem:[%s2079_s14 + $0x70] sm:$0xff]  ;;  %v657_v27 = vld [vmem:[%s2079_s14 + $0x88] sm:$0xff]  ;;  %v659_v28 = vld [vmem:[%s2079_s14 + $0x98] sm:$0xff] }
  0x4b   : > { %v757_v29 = vld [vmem:[%s2094_s0] sm:$0xff]  ;;  %v758_v30 = vld [vmem:[%s2094_s0 + $0x8] sm:$0xff]  ;;  %v1700_v31 = vpack.c.bf16 %v654_v26, %v652_v25  ;;  %v759_v33 = vld [vmem:[%s2094_s0 + $0x10] sm:$0xff]  ;;  %v1702_v35 = vpack.c.bf16 %v659_v28, %v657_v27 }
  0x4c   : > { %v1719_v32 = vpack.c.bf16 %v758_v30, %v757_v29  ;;  %v760_v34 = vld [vmem:[%s2094_s0 + $0x18] sm:$0xff]  ;;  %v656_v36 = vld [vmem:[%s2079_s14 + $0x80] sm:$0xff]  ;;  %v658_v37 = vld [vmem:[%s2079_s14 + $0x90] sm:$0xff] }
  0x4d   : > { %1693 = vmatpush1.bf16.msra.mxu0 %v1692_v17  ;;  %v661_v38 = vld [vmem:[%s2079_s14 + $0xa8] sm:$0xff]  ;;  %v663_v39 = vld [vmem:[%s2079_s14 + $0xb8] sm:$0xff]  ;;  %v1722_v40 = vpack.c.bf16 %v760_v34, %v759_v33  ;;  %v761_v41 = vld [vmem:[%s2094_s0 + $0x20] sm:$0xff]  ;;  %v1704_v43 = vpack.c.bf16 %v658_v37, %v656_v36 }
  0x4e   : > { %1695 = vmatprep.subr.bf16.mxu0 %v1694_v18  ;;  %1720 = vmatpush3.bf16.msra.mxu1 %v1719_v32  ;;  %v762_v42 = vld [vmem:[%s2094_s0 + $0x28] sm:$0xff]  ;;  %v1706_v44 = vpack.c.bf16 %v663_v39, %v661_v38  ;;  %v660_v45 = vld [vmem:[%s2079_s14 + $0xa0] sm:$0xff]  ;;  %v662_v46 = vld [vmem:[%s2079_s14 + $0xb0] sm:$0xff] }
  0x4f   : > { %1721 = vmatprep.subr.bf16.mxu1 %v1951_v10  ;;  %v665_v47 = vld [vmem:[%s2079_s14 + $0xc8] sm:$0xff]  ;;  %v667_v48 = vld [vmem:[%s2079_s14 + $0xd8] sm:$0xff]  ;;  %v1725_v49 = vpack.c.bf16 %v762_v42, %v761_v41  ;;  %v763_v50 = vld [vmem:[%s2094_s0 + $0x30] sm:$0xff]  ;;  %v1708_v52 = vpack.c.bf16 %v662_v46, %v660_v45  ;;  %v674_v42 = vlaneseq }
  0x50   : > { %v764_v51 = vld [vmem:[%s2094_s0 + $0x38] sm:$0xff]  ;;  %v1710_v53 = vpack.c.bf16 %v667_v48, %v665_v47  ;;  %v664_v54 = vld [vmem:[%s2079_s14 + $0xc0] sm:$0xff]  ;;  %v666_v55 = vld [vmem:[%s2079_s14 + $0xd0] sm:$0xff] }
  0x51   : > { %1697 = vmatpush1.bf16.msra.mxu0 %v1696_v23  ;;  %v669_v56 = vld [vmem:[%s2079_s14 + $0xe8] sm:$0xff]  ;;  %v671_v57 = vld [vmem:[%s2079_s14 + $0xf8] sm:$0xff]  ;;  %v1728_v58 = vpack.c.bf16 %v764_v51, %v763_v50  ;;  %v765_v59 = vld [vmem:[%s2094_s0 + $0x40] sm:$0xff]  ;;  %v1712_v61 = vpack.c.bf16 %v666_v55, %v664_v54 }
  0x52   : > { %1699 = vmatprep.subr.bf16.mxu0 %v1698_v24  ;;  %1723 = vmatpush3.bf16.msra.mxu1 %v1722_v40  ;;  %v766_v60 = vld [vmem:[%s2094_s0 + $0x48] sm:$0xff]  ;;  %v1714_v62 = vpack.c.bf16 %v671_v57, %v669_v56  ;;  %v668_v63 = vld [vmem:[%s2079_s14 + $0xe0] sm:$0xff]  ;;  %v670_v0 = vld [vmem:[%s2079_s14 + $0xf0] sm:$0xff]  ;;  %s2406_s14 = scalar_lea.vmem %s2374_s4, %s2072_s24 }
  0x53   : > { %1724 = vmatprep.subr.bf16.mxu1 %v1951_v10  ;;  %v1731_v1 = vpack.c.bf16 %v766_v60, %v765_v59  ;;  %v767_v2 = vld [vmem:[%s2094_s0 + $0x50] sm:$0xff]  ;;  %v768_v3 = vld [vmem:[%s2094_s0 + $0x58] sm:$0xff]  ;;  %v1716_v4 = vpack.c.bf16 %v670_v0, %v668_v63  ;;  %v850_v5 = vld [vmem:[%s2099_s29] sm:$0xff] }
  0x54   : > { %v851_v6 = vld [vmem:[%s2099_s29 + $0x8] sm:$0xff]  ;;  %v1734_v7 = vpack.c.bf16 %v768_v3, %v767_v2  ;;  %v769_v8 = vld [vmem:[%s2094_s0 + $0x60] sm:$0xff]  ;;  %v2190_v12 = vld [vmem:[#allocation2 + $0x8] sm:$0xff] }
  0x55   : > { %1701 = vmatpush1.bf16.msra.mxu0 %v1700_v31  ;;  %v770_v11 = vld [vmem:[%s2094_s0 + $0x68] sm:$0xff]  ;;  %v1743_v13 = vpack.c.bf16 %v851_v6, %v850_v5  ;;  %v852_v14 = vld [vmem:[%s2099_s29 + $0x10] sm:$0xff]  ;;  %v853_v15 = vld [vmem:[%s2099_s29 + $0x18] sm:$0xff] }
  0x56   : > { %1703 = vmatprep.subr.bf16.mxu0 %v1702_v35  ;;  %1726 = vmatpush3.bf16.msra.mxu1 %v1725_v49  ;;  %v1737_v16 = vpack.c.bf16 %v770_v11, %v769_v8  ;;  %v1746_v17 = vpack.c.bf16 %v853_v15, %v852_v14  ;;  %v854_v18 = vld [vmem:[%s2099_s29 + $0x20] sm:$0xff]  ;;  %v855_v19 = vld [vmem:[%s2099_s29 + $0x28] sm:$0xff]  ;;  %v856_v21 = vld [vmem:[%s2099_s29 + $0x30] sm:$0xff] }
  0x57   : > { %1727 = vmatprep.subr.bf16.mxu1 %v1951_v10  ;;  %v1749_v20 = vpack.c.bf16 %v855_v19, %v854_v18  ;;  %v857_v22 = vld [vmem:[%s2099_s29 + $0x38] sm:$0xff]  ;;  %v858_v24 = vld [vmem:[%s2099_s29 + $0x40] sm:$0xff]  ;;  %v859_v25 = vld [vmem:[%s2099_s29 + $0x48] sm:$0xff] }
  0x58   : > { %v1752_v23 = vpack.c.bf16 %v857_v22, %v856_v21  ;;  %v1755_v26 = vpack.c.bf16 %v859_v25, %v858_v24  ;;  %v860_v27 = vld [vmem:[%s2099_s29 + $0x50] sm:$0xff]  ;;  %v861_v28 = vld [vmem:[%s2099_s29 + $0x58] sm:$0xff]  ;;  %v862_v30 = vld [vmem:[%s2099_s29 + $0x60] sm:$0xff] }
  0x59   : > { %1705 = vmatpush1.bf16.msra.mxu0 %v1704_v43  ;;  %v1758_v29 = vpack.c.bf16 %v861_v28, %v860_v27  ;;  %v863_v31 = vld [vmem:[%s2099_s29 + $0x68] sm:$0xff]  ;;  %v771_v33 = vld [vmem:[%s2094_s0 + $0x70] sm:$0xff]  ;;  %v772_v34 = vld [vmem:[%s2094_s0 + $0x78] sm:$0xff]  ;;  %v2226_v43 = vshrl.u32 %v674_v42, 7 }
  0x5a   : > { %1707 = vmatprep.subr.bf16.mxu0 %v1706_v44  ;;  %1729 = vmatpush3.bf16.msra.mxu1 %v1728_v58  ;;  %v1761_v32 = vpack.c.bf16 %v863_v31, %v862_v30  ;;  %v1740_v35 = vpack.c.bf16 %v772_v34, %v771_v33  ;;  %v864_v36 = vld [vmem:[%s2099_s29 + $0x70] sm:$0xff]  ;;  %v865_v37 = vld [vmem:[%s2099_s29 + $0x78] sm:$0xff]  ;;  %v948_v39 = vld [vmem:[%s2108_s17 + $0x8] sm:$0xff] }
  0x5b   : > { %1730 = vmatprep.subr.bf16.mxu1 %v1951_v10  ;;  %v1764_v38 = vpack.c.bf16 %v865_v37, %v864_v36  ;;  %v950_v40 = vld [vmem:[%s2108_s17 + $0x18] sm:$0xff]  ;;  %v676_v44 = vsub.s32 0, %v2226_v43  ;;  %v672_v45 = vld [vmem:[%s2405_s3] sm:$0x3]  ;;  %v680_v46 = vsub.s32 1, %v2226_v43  ;;  %v949_v50 = vld [vmem:[%s2108_s17 + $0x10] sm:$0xff] }
  0x5c   : > { %v1766_v41 = vpack.c.bf16 %v950_v40, %v948_v39  ;;  %v947_v49 = vld [vmem:[%s2108_s17] sm:$0xff]  ;;  %v956_v63 = vld [vmem:[%s2108_s17 + $0x48] sm:$0xff]  ;;  %v958_v0 = vld [vmem:[%s2108_s17 + $0x58] sm:$0xff] }
  0x5d   : > { %1709 = vmatpush1.bf16.msra.mxu0 %v1708_v52  ;;  %v677_v47 = vrot.slane %v672_v45, %v676_v44  ;;  %v681_v48 = vrot.slane %v672_v45, %v680_v46  ;;  %v952_v52 = vld [vmem:[%s2108_s17 + $0x28] sm:$0xff]  ;;  %v1768_v57 = vpack.c.bf16 %v949_v50, %v947_v49  ;;  %v951_v60 = vld [vmem:[%s2108_s17 + $0x20] sm:$0xff]  ;;  %v1774_v2 = vpack.c.bf16 %v958_v0, %v956_v63  ;;  %v965_v19 = vld [vmem:[%s2108_s17 + $0x90] sm:$0xff] }
  0x5e   : > { %1711 = vmatprep.subr.bf16.mxu0 %v1710_v53  ;;  %1732 = vmatpush3.bf16.msra.mxu1 %v1731_v1  ;;  %v954_v53 = vld [vmem:[%s2108_s17 + $0x38] sm:$0xff]  ;;  %v955_v3 = vld [vmem:[%s2108_s17 + $0x40] sm:$0xff]  ;;  %v960_v6 = vld [vmem:[%s2108_s17 + $0x68] sm:$0xff] }
  0x5f   : > { %1733 = vmatprep.subr.bf16.mxu1 %v1951_v10  ;;  %v1770_v59 = vpack.c.bf16 %v954_v53, %v952_v52  ;;  %v959_v11 = vld [vmem:[%s2108_s17 + $0x60] sm:$0xff]  ;;  %v964_v15 = vld [vmem:[%s2108_s17 + $0x88] sm:$0xff]  ;;  %v970_v22 = vld [vmem:[%s2108_s17 + $0xb8] sm:$0xff] }
  0x60   : > { %v963_v18 = vld [vmem:[%s2108_s17 + $0x80] sm:$0xff]  ;;  %v968_v21 = vld [vmem:[%s2108_s17 + $0xa8] sm:$0xff]  ;;  %v969_v25 = vld [vmem:[%s2108_s17 + $0xb0] sm:$0xff] }
  0x61   : > { %1713 = vmatpush1.bf16.msra.mxu0 %v1712_v61  ;;  %v953_v61 = vld [vmem:[%s2108_s17 + $0x30] sm:$0xff]  ;;  %v967_v24 = vld [vmem:[%s2108_s17 + $0xa0] sm:$0xff]  ;;  %v972_v27 = vld [vmem:[%s2108_s17 + $0xc8] sm:$0xff] }
  0x62   : > { %1715 = vmatprep.subr.bf16.mxu0 %v1714_v62  ;;  %1735 = vmatpush3.bf16.msra.mxu1 %v1734_v7  ;;  %v1772_v1 = vpack.c.bf16 %v953_v61, %v951_v60  ;;  %v962_v7 = vld [vmem:[%s2108_s17 + $0x78] sm:$0xff]  ;;  %v971_v30 = vld [vmem:[%s2108_s17 + $0xc0] sm:$0xff]  ;;  %v973_v31 = vld [vmem:[%s2108_s17 + $0xd0] sm:$0xff] }
  0x63   : > { %1736 = vmatprep.subr.bf16.mxu1 %v1951_v10  ;;  %v1778_v8 = vpack.c.bf16 %v962_v7, %v960_v6  ;;  %v974_v28 = vld [vmem:[%s2108_s17 + $0xd8] sm:$0xff]  ;;  %v976_v33 = vld [vmem:[%s2108_s17 + $0xe8] sm:$0xff]  ;;  %v975_v36 = vld [vmem:[%s2108_s17 + $0xe0] sm:$0xff] }
  0x64   : > { %v978_v34 = vld [vmem:[%s2108_s17 + $0xf8] sm:$0xff]  ;;  %v977_v37 = vld [vmem:[%s2108_s17 + $0xf0] sm:$0xff]  ;;  %v1064_v39 = vld [vmem:[%s2118_s13] sm:$0xff] }
  0x65   : > { %1717 = vmatpush1.bf16.msra.mxu0 %v1716_v4  ;;  %v957_v4 = vld [vmem:[%s2108_s17 + $0x50] sm:$0xff]  ;;  %v1065_v40 = vld [vmem:[%s2118_s13 + $0x8] sm:$0xff]  ;;  %v1067_v45 = vld [vmem:[%s2118_s13 + $0x18] sm:$0xff] }
  0x66   : > { %1742 = vmatprep.subr.bf16.mxu0 %v1951_v10  ;;  %1738 = vmatpush3.bf16.msra.mxu1 %v1737_v16  ;;  %v1776_v5 = vpack.c.bf16 %v957_v4, %v955_v3  ;;  %v966_v16 = vld [vmem:[%s2108_s17 + $0x98] sm:$0xff]  ;;  %v1066_v42 = vld [vmem:[%s2118_s13 + $0x10] sm:$0xff]  ;;  %v1069_v49 = vld [vmem:[%s2118_s13 + $0x28] sm:$0xff] }
  0x67   : > { %1739 = vmatprep.subr.bf16.mxu1 %v1951_v10  ;;  %v1071_v52 = vld [vmem:[%s2118_s13 + $0x38] sm:$0xff]  ;;  %v1076_v60 = vld [vmem:[%s2118_s13 + $0x60] sm:$0xff]  ;;  %v1077_v61 = vld [vmem:[%s2118_s13 + $0x68] sm:$0xff] }
  0x68   : > { %749 = vmatmul.mubr.f32.vlgmr.msra.gmra.mrb[0].mxu0 %v2190_v12  ;;  %v1463_v63 = vld [vmem:[%s2406_s14] ss:$0 sm:$0xff]  ;;  %v638_v6 = vld [vmem:[#allocation2] sm:$0xff] }
  0x69   : > { %1744 = vmatpush3.bf16.msra.mxu0 %v1743_v13  ;;  %1613 = vmatprep.mubr.msk.f32.mxu0 %vm1952_vm0, %v1950_v9  ;;  %v961_v13 = vld [vmem:[%s2108_s17 + $0x70] sm:$0xff]  ;;  %v1464_v7 = vld [vmem:[%s2407_s21] ss:$0 sm:$0xff] }
  0x6a   : > { %1745 = vmatprep.subr.bf16.mxu0 %v1951_v10  ;;  %1741 = vmatpush3.bf16.msra.mxu1 %v1740_v35  ;;  %v1780_v14 = vpack.c.bf16 %v961_v13, %v959_v11  ;;  %v1794_v35 = vpack.c.bf16 %v978_v34, %v976_v33  ;;  %v1158_v11 = vld [vmem:[%s2127_s2 + $0x8] sm:$0xff] }
  0x6b   : > { %1767 = vmatprep.subr.bf16.mxu1 %v1766_v41  ;;  %v1799_v41 = vpack.c.bf16 %v1065_v40, %v1064_v39  ;;  %v1170_v33 = vld [vmem:[%s2127_s2 + $0x68] sm:$0xff]  ;;  %v1172_v39 = vld [vmem:[%s2127_s2 + $0x78] sm:$0xff] }
  0x6d   : > { %1747 = vmatpush3.bf16.msra.mxu0 %v1746_v17  ;;  %v1782_v17 = vpack.c.bf16 %v966_v16, %v964_v15 }
  0x6e   : > { %1748 = vmatprep.subr.bf16.mxu0 %v1951_v10 }
  0x71   : > { %1750 = vmatpush3.bf16.msra.mxu0 %v1749_v20  ;;  %v1784_v20 = vpack.c.bf16 %v965_v19, %v963_v18  ;;  %v1159_v18 = vld [vmem:[%s2127_s2 + $0x10] sm:$0xff]  ;;  %v1160_v19 = vld [vmem:[%s2127_s2 + $0x18] sm:$0xff] }
  0x72   : > { %1751 = vmatprep.subr.bf16.mxu0 %v1951_v10 }
  0x75   : > { %1753 = vmatpush3.bf16.msra.mxu0 %v1752_v23  ;;  %v1786_v23 = vpack.c.bf16 %v970_v22, %v968_v21  ;;  %v1161_v21 = vld [vmem:[%s2127_s2 + $0x20] sm:$0xff]  ;;  %v1162_v22 = vld [vmem:[%s2127_s2 + $0x28] sm:$0xff] }
  0x76   : > { %1754 = vmatprep.subr.bf16.mxu0 %v1951_v10 }
  0x79   : > { %1756 = vmatpush3.bf16.msra.mxu0 %v1755_v26  ;;  %v1788_v26 = vpack.c.bf16 %v969_v25, %v967_v24  ;;  %v1163_v24 = vld [vmem:[%s2127_s2 + $0x30] sm:$0xff]  ;;  %v1164_v25 = vld [vmem:[%s2127_s2 + $0x38] sm:$0xff] }
  0x7a   : > { %1757 = vmatprep.subr.bf16.mxu0 %v1951_v10 }
  0x7d   : > { %1759 = vmatpush3.bf16.msra.mxu0 %v1758_v29  ;;  %v1790_v29 = vpack.c.bf16 %v974_v28, %v972_v27  ;;  %v1165_v27 = vld [vmem:[%s2127_s2 + $0x40] sm:$0xff] }
  0x7e   : > { %1760 = vmatprep.subr.bf16.mxu0 %v1951_v10 }
  0x81   : > { %1762 = vmatpush3.bf16.msra.mxu0 %v1761_v32  ;;  %v1792_v32 = vpack.c.bf16 %v973_v31, %v971_v30  ;;  %v1168_v30 = vld [vmem:[%s2127_s2 + $0x58] sm:$0xff] }
  0x82   : > { %1763 = vmatprep.subr.bf16.mxu0 %v1951_v10 }
  0x85   : > { %1765 = vmatpush3.bf16.msra.mxu0 %v1764_v38  ;;  %v1796_v38 = vpack.c.bf16 %v977_v37, %v975_v36  ;;  %v1079_v36 = vld [vmem:[%s2118_s13 + $0x78] sm:$0xff] }
  0x86   : > { %1798 = vmatprep.subr.bf16.mxu0 %v1951_v10 }
 0x13b   : > { %v750_v51 = vpop.f32.mrb[0].mxu0 }
 0x13c   : > { %v751_v54 = vadd.f32 %v750_v51, %v677_v47  ;;  %v752_v55 = vpop.f32.mrb[1].mxu0  ;;  %v1802_v47 = vpack.c.bf16 %v1067_v45, %v1066_v42  ;;  %v1070_v51 = vld [vmem:[%s2118_s13 + $0x30] sm:$0xff] }
 0x13d   : > { %v753_v56 = vadd.f32 %v752_v55, %v681_v48  ;;  %v1068_v48 = vld [vmem:[%s2118_s13 + $0x20] sm:$0xff]  ;;  %v1808_v53 = vpack.c.bf16 %v1071_v52, %v1070_v51  ;;  %v1073_v55 = vld [vmem:[%s2118_s13 + $0x48] sm:$0xff] }
 0x13e   : > { %v755_v58 = vmax.f32 %v751_v54, 0.0  ;;  %v1805_v50 = vpack.c.bf16 %v1069_v49, %v1068_v48  ;;  %v1072_v54 = vld [vmem:[%s2118_s13 + $0x40] sm:$0xff] }
 0x13f   : > { %v756_v62 = vmax.f32 %v753_v56, 0.0  ;;  %v1811_v56 = vpack.c.bf16 %v1073_v55, %v1072_v54  ;;  %v1465_v52 = vld [vmem:[%s621_s1] ss:$0 sm:$0xff] }
 0x140   : > { %1579 = vmatmul.mubr.f32.vlgmr.msra.gmra.mrb[0].mxu1 %v755_v58  ;;  %v1075_v58 = vld [vmem:[%s2118_s13 + $0x58] sm:$0xff] }
 0x141   : > { %1614 = vmatmul.mubr.f32.vlgmr.msra.gmra.mrb[2].mxu0 %v756_v62  ;;  %1769 = vmatpush1.bf16.msra.mxu1 %v1768_v57  ;;  %v1074_v57 = vld [vmem:[%s2118_s13 + $0x50] sm:$0xff]  ;;  %v1817_v62 = vpack.c.bf16 %v1077_v61, %v1076_v60 }
 0x142   : > { %1771 = vmatprep.subr.bf16.mxu1 %v1770_v59  ;;  %1055 = vmatprep.mubr.f32.mxu1 %v1950_v9  ;;  %v1814_v59 = vpack.c.bf16 %v1075_v58, %v1074_v57 }
 0x143   : > { %1648 = vmatprep.mubr.msk.f32.mxu0 %vm1952_vm0, %v1950_v9  ;;  %1800 = vmatpush3.bf16.msra.mxu0 %v1799_v41  ;;  %v979_v41 = vld [vmem:[%s2113_s22] sm:$0x3] }
 0x144   : > { %1801 = vmatprep.subr.bf16.mxu0 %v1951_v10  ;;  %v984_v42 = vrot.slane %v979_v41, %v676_v44  ;;  %v988_v45 = vrot.slane %v979_v41, %v680_v46 }
 0x145   : > { %1773 = vmatpush1.bf16.msra.mxu1 %v1772_v1 }
 0x146   : > { %1775 = vmatprep.subr.bf16.mxu1 %v1774_v2 }
 0x147   : > { %1803 = vmatpush3.bf16.msra.mxu0 %v1802_v47 }
 0x148   : > { %1804 = vmatprep.subr.bf16.mxu0 %v1951_v10 }
 0x149   : > { %1777 = vmatpush1.bf16.msra.mxu1 %v1776_v5 }
 0x14a   : > { %1779 = vmatprep.subr.bf16.mxu1 %v1778_v8  ;;  %v1157_v8 = vld [vmem:[%s2127_s2] sm:$0xff] }
 0x14b   : > { %1806 = vmatpush3.bf16.msra.mxu0 %v1805_v50  ;;  %v1823_v16 = vpack.c.bf16 %v1158_v11, %v1157_v8 }
 0x14c   : > { %1807 = vmatprep.subr.bf16.mxu0 %v1951_v10 }
 0x14d   : > { %1781 = vmatpush1.bf16.msra.mxu1 %v1780_v14 }
 0x14e   : > { %1783 = vmatprep.subr.bf16.mxu1 %v1782_v17 }
 0x14f   : > { %1809 = vmatpush3.bf16.msra.mxu0 %v1808_v53 }
 0x150   : > { %1810 = vmatprep.subr.bf16.mxu0 %v1951_v10 }
 0x151   : > { %1785 = vmatpush1.bf16.msra.mxu1 %v1784_v20  ;;  %v1826_v20 = vpack.c.bf16 %v1160_v19, %v1159_v18 }
 0x152   : > { %1787 = vmatprep.subr.bf16.mxu1 %v1786_v23  ;;  %v1829_v23 = vpack.c.bf16 %v1162_v22, %v1161_v21 }
 0x153   : > { %1812 = vmatpush3.bf16.msra.mxu0 %v1811_v56  ;;  %v1466_v56 = vld [vmem:[%s629_s19] ss:$0 sm:$0xff] }
 0x154   : > { %1813 = vmatprep.subr.bf16.mxu0 %v1951_v10 }
 0x155   : > { %1789 = vmatpush1.bf16.msra.mxu1 %v1788_v26  ;;  %v1832_v26 = vpack.c.bf16 %v1164_v25, %v1163_v24 }
 0x156   : > { %1791 = vmatprep.subr.bf16.mxu1 %v1790_v29  ;;  %v1167_v29 = vld [vmem:[%s2127_s2 + $0x50] sm:$0xff] }
 0x157   : > { %1815 = vmatpush3.bf16.msra.mxu0 %v1814_v59  ;;  %v1838_v31 = vpack.c.bf16 %v1168_v30, %v1167_v29 }
 0x158   : > { %1816 = vmatprep.subr.bf16.mxu0 %v1951_v10 }
 0x159   : > { %1793 = vmatpush1.bf16.msra.mxu1 %v1792_v32  ;;  %v1169_v32 = vld [vmem:[%s2127_s2 + $0x60] sm:$0xff] }
 0x15a   : > { %1795 = vmatprep.subr.bf16.mxu1 %v1794_v35  ;;  %v1841_v34 = vpack.c.bf16 %v1170_v33, %v1169_v32  ;;  %v1078_v35 = vld [vmem:[%s2118_s13 + $0x70] sm:$0xff] }
 0x15b   : > { %1818 = vmatpush3.bf16.msra.mxu0 %v1817_v62  ;;  %v1820_v37 = vpack.c.bf16 %v1079_v36, %v1078_v35 }
 0x15c   : > { %1819 = vmatprep.subr.bf16.mxu0 %v1951_v10 }
 0x15d   : > { %1797 = vmatpush1.bf16.msra.mxu1 %v1796_v38  ;;  %v1171_v38 = vld [vmem:[%s2127_s2 + $0x70] sm:$0xff] }
 0x15e   : > { %1822 = vmatprep.subr.bf16.mxu1 %v1951_v10  ;;  %v1844_v40 = vpack.c.bf16 %v1172_v39, %v1171_v38 }
 0x15f   : > { %1821 = vmatpush3.bf16.msra.mxu0 %v1820_v37 }
 0x213   : > { %v846_v0 = vpop.f32.mrb[0].mxu1 }
 0x214   : > { %v847_v1 = vadd.f32 %v1463_v63, %v846_v0  ;;  %v1580_v2 = vpop.f32.mrb[1].mxu1  ;;  %v939_v3 = vpop.f32.mrb[2].mxu0 }
 0x215   : > { %v1615_v4 = vpop.f32.mrb[3].mxu0  ;;  %v940_v14 = vadd.f32 %v1464_v7, %v939_v3 }
 0x216   : > { %v943_v5 = vmul.f32 1.442695, %v847_v1 }
 0x218   : > { %1875 = vpow2.f32 %v943_v5 }
 0x222   : > { %v1876_v13 = vpop.eup %1875 }
 0x223   : > { %v945_v15 = vmul.f32 %v1876_v13, %v638_v6 }
 0x225   : > { %v946_v17 = vadd.f32 %v945_v15, %v940_v14 }
 0x227   : > { %1254 = vst [vmem:[#allocation2] sm:$0xff] %v946_v17  ;;  %1056 = vmatmul.mubr.f32.vlgmr.msra.gmra.mrb[2].mxu1 %v946_v17 }
 0x228   : > { %1824 = vmatpush3.bf16.msra.mxu1 %v1823_v16  ;;  %1683 = vmatprep.mubr.msk.f32.mxu1 %vm1952_vm0, %v1950_v9  ;;  %v1166_v9 = vld [vmem:[%s2127_s2 + $0x48] sm:$0xff] }
 0x229   : > { %1825 = vmatprep.subr.bf16.mxu1 %v1951_v10  ;;  %v1835_v28 = vpack.c.bf16 %v1166_v9, %v1165_v27 }
 0x22c   : > { %1827 = vmatpush3.bf16.msra.mxu1 %v1826_v20 }
 0x22d   : > { %1828 = vmatprep.subr.bf16.mxu1 %v1951_v10 }
 0x22e   : > { %v1260_v61 = vld [vmem:[#allocation2] sm:$0xff] (!%p1467_p4) }
 0x22f   : > { %1262 = vst [vmem:[#allocation6] sm:$0xff] (!%p1467_p4), %v1260_v61 }
 0x230   : > { %1830 = vmatpush3.bf16.msra.mxu1 %v1829_v23 }
 0x231   : > { %1831 = vmatprep.subr.bf16.mxu1 %v1951_v10 }
 0x234   : > { %1833 = vmatpush3.bf16.msra.mxu1 %v1832_v26 }
 0x235   : > { %1834 = vmatprep.subr.bf16.mxu1 %v1951_v10 }
 0x238   : > { %1836 = vmatpush3.bf16.msra.mxu1 %v1835_v28 }
 0x239   : > { %1837 = vmatprep.subr.bf16.mxu1 %v1951_v10 }
 0x23c   : > { %1839 = vmatpush3.bf16.msra.mxu1 %v1838_v31 }
 0x23d   : > { %1840 = vmatprep.subr.bf16.mxu1 %v1951_v10 }
 0x240   : > { %1842 = vmatpush3.bf16.msra.mxu1 %v1841_v34 }
 0x241   : > { %1843 = vmatprep.subr.bf16.mxu1 %v1951_v10 }
 0x244   : > { %1845 = vmatpush3.bf16.msra.mxu1 %v1844_v40 }
 0x2fa   : > { %v1057_v47 = vpop.f32.mrb[2].mxu1 }
 0x2fb   : > { %v1058_v48 = vadd.f32 %v1057_v47, %v984_v42  ;;  %v1059_v10 = vpop.f32.mrb[3].mxu1 }
 0x2fc   : > { %v1060_v49 = vadd.f32 %v1059_v10, %v988_v45 }
 0x2fd   : > { %v1062_v50 = vmax.f32 %v1058_v48, 0.0 }
 0x2fe   : > { %v1063_v51 = vmax.f32 %v1060_v49, 0.0 }
 0x2ff   : > { %1649 = vmatmul.mubr.f32.vlgmr.msra.gmra.mrb[4].mxu0 %v1062_v50 }
 0x300   : > { %1684 = vmatmul.mubr.f32.vlgmr.msra.gmra.mrb[4].mxu1 %v1063_v51 }
 0x3d2   : > { %v1153_v53 = vpop.f32.mrb[4].mxu0 }
 0x3d3   : > { %v1154_v54 = vadd.f32 %v1465_v52, %v1153_v53  ;;  %v1650_v44 = vpop.f32.mrb[5].mxu0  ;;  %v1246_v55 = vpop.f32.mrb[4].mxu1 }
 0x3d4   : > { %v1685_v43 = vpop.f32.mrb[5].mxu1  ;;  %v1247_v58 = vadd.f32 %v1466_v56, %v1246_v55 }
 0x3d5   : > { %v1250_v46 = vmul.f32 1.442695, %v1154_v54 }
 0x3d7   : > { %1877 = vpow2.f32 %v1250_v46 }
 0x3e0   : > { %1259 = sbr.rel (%p1467_p4) target bundleno = 1007 (0x3ef), region = 84 }
 0x3e1   : > { %v1878_v57 = vpop.eup %1877 }
 0x3e2   : > { %v1252_v59 = vmul.f32 %v1878_v57, %v2190_v12 }
 0x3e4   : > { %v1253_v60 = vadd.f32 %v1252_v59, %v1247_v58 }
 0x3e6   : > { %1255 = vst [vmem:[#allocation2 + $0x8] sm:$0xff] %v1253_v60 }
 0x3ed   : > { %v1261_v62 = vld [vmem:[#allocation2 + $0x8] sm:$0xff] }
 0x3ee   : > { %1263 = vst [vmem:[#allocation6 + $0x8] sm:$0xff] %v1261_v62 }
 0x3ef PF: > { %p1860_p6 = scmp.eq.s32.totalorder %s2030_s26, 1  ;;  %s1953_s23 = smov [#allocation6]  }
 0x3f0   : > { %s1271_s24 = sshll.u32 %s1953_s23, 4  ;;  %s1272_s24 = int_to_ptr.vmem [resolvable:$true] %s1271_s24 }
 0x3f1   : > { %s1907_s13 = scalar_lea.vmem %s1272_s24, 256  ;;  %p1914_p13 = scmp.lt.s32.totalorder %s1272_s24, %s1272_s24 }
 0x3f2   : > { %p1908_p10 = scmp.ne.s32.totalorder %s1272_s24, %s1907_s13  ;;  %p1915_p0 = scmp.lt.s32.totalorder %s1907_s13, %s1907_s13 }
 0x3f4   : > { %p1909_p11 = pnand %p1908_p10, %p1860_p6  ;;  %p1916_p1 = por %p1915_p0, %p1914_p13 }
 0x3f6   : > { %p1910_p12 = pneg %p1909_p11 }
 0x3f8   : > { %p1917_p5 = pnand %p1916_p1, %p1910_p12 }
 0x3fa   : > { %1920 = shalt.err (!%p1917_p5)
}
 0x3fb   : > { %s2408_s30 = sld [smem:[#allocation15_spill]] }
 0x401   : > { %s1921_s2 = scalar_lea.hbm %s2408_s30, 256 }
 0x402   : > { %p1922_p7 = scmp.ne.s32.totalorder %s2408_s30, %s1921_s2  ;;  %p1927_p2 = scmp.lt.u32.totalorder %s1921_s2, %s2408_s30 }
 0x404   : > { %p1923_p9 = pnand %p1922_p7, %p1860_p6 }
 0x406   : > { %p1924_p8 = pneg %p1923_p9 }
 0x408   : > { %p1929_p3 = pnand %p1927_p2, %p1924_p8 }
 0x40a   : > { %1932 = shalt.err (!%p1929_p3)
}
 0x40b   : > { %1851 = dma.vmem_to_hbm [thread:$0]  (%p1860_p6), %s1272_s24, 256, %s2408_s30, [#allocation5]  }
 0x40c   : > { %1942 = dma.done.wait (%p1860_p6), [#allocation5], 256  }
 0x40d   : > { %1944 = vsyncadd (%p1860_p6), [#allocation5], 4294967040 }
 0x40e PF: > { %s2409_s14 = sld [smem:[#allocation9_spill]] }
 0x414   : > { %s25_s25 = sadd.s32 1, %s2409_s14  }
 0x415   : > { %p22_p4 = scmp.ge.s32.totalorder %s25_s25, 4  }
 0x417   :  { %24 = sbr.rel (!%p22_p4) target bundleno = 8 (0x8), region = 145 }
 0x41e   :  { %1284 = vsyncpa [#allocation4], 1 }
 0x41f   :  { %1286 = vsyncpa [#allocation4 + $0x1], 1 }
 0x420   :  { %1287 = vsyncpa [#allocation5], 1 }
 0x421   :  { %1289 = vsyncpa [#allocation5 + $0x1], 1 }

</bundles_post_ra>
